<compile_context>
chip_gen: v7x
topology: tpu7x:2x2x1
jax: 0.10.0
libtpu: 0.0.40
codegen_flags: <defaults>
</compile_context>

<pallas_src>
import functools

import jax
import jax.numpy as jnp
from jax.experimental import pallas as pl
from jax.experimental.pallas import tpu as pltpu

SCALE = 32.0     # Config.SCALE
MARGIN = 0.4     # Config.MARGIN
EPS = 1e-12      # F.normalize eps
CLIP = 1e-6


def cosface_kernel(x_ref, wt_ref, labels_ref, out_ref):
    j = pl.program_id(0)
    tc = out_ref.shape[1]

    x = x_ref[...]        # (B, D)  f32, resident across the class grid
    wt = wt_ref[...]      # (D, TC) f32, streamed tile of W^T

    # F.normalize(v, p=2): v / max(||v||, eps)  ==  v * rsqrt(max(sum v^2, eps^2))
    inv_x = jax.lax.rsqrt(
        jnp.maximum(jnp.sum(x * x, axis=1, keepdims=True), EPS * EPS))      # (B, 1)
    inv_w = jax.lax.rsqrt(
        jnp.maximum(jnp.sum(wt * wt, axis=0, keepdims=True), EPS * EPS))    # (1, TC)

    # Raw matmul on the MXU in bf16 with f32 accumulation; norms folded in after,
    # so normalized copies of x / W are never materialized.
    s = jnp.dot(x.astype(jnp.bfloat16), wt.astype(jnp.bfloat16),
                preferred_element_type=jnp.float32)                         # (B, TC)
    logits = jnp.clip(s * inv_x * inv_w, -1.0 + CLIP, 1.0 - CLIP)

    # Fused one-hot margin + scale epilogue (no float one-hot, no extra vmul).
    labels = labels_ref[...]                                                # (B, 1) int32
    cls_ids = j * tc + jax.lax.broadcasted_iota(jnp.int32, logits.shape, 1)
    out_ref[...] = jnp.where(cls_ids == labels,
                             SCALE * (logits - MARGIN),
                             SCALE * logits)


@functools.partial(jax.jit, static_argnames=("block_c", "vmem_limit_bytes"))
def cosface(embeddings, W, labels, *, block_c=1024, vmem_limit_bytes=None):
    """embeddings: (B, D) f32, W: (C, D) f32 (PyTorch layout), labels: (B,) int -> (B, C) f32.

    block_c: class-tile width (multiple of 128). Default 1024 keeps the
    double-buffered f32 weight tile ~10 MiB at D=1280, safe for v7x's 64 MiB
    VMEM (32 MiB scoped default). On v5e/v6e use block_c=2048..4096 together
    with vmem_limit_bytes (e.g. 64<<20) to amortize per-step grid overhead.
    """
    B, D = embeddings.shape
    C, D2 = W.shape
    assert D == D2

    # Class tile: multiple of 128 (lane-dense stores, full MXU columns).
    c128 = pl.cdiv(C, 128) * 128
    tc = max(128, min((int(block_c) // 128) * 128, c128))
    c_full = pl.cdiv(C, tc) * tc           # padded class count, multiple of tc
    grid = (c_full // tc,)

    # Pad classes with zero rows and pre-transpose -> (D, C_full): no in-kernel
    # transpose and the matmul output is naturally lane-dense along classes.
    # (In a real training setup, store the weight in this layout.)
    wt = jnp.pad(W, ((0, c_full - C), (0, 0))).T
    labels2d = labels.reshape(B, 1).astype(jnp.int32)

    out = pl.pallas_call(
        cosface_kernel,
        out_shape=jax.ShapeDtypeStruct((B, c_full), jnp.float32),
        grid_spec=pltpu.PrefetchScalarGridSpec(
            num_scalar_prefetch=0,
            grid=grid,
            in_specs=[
                pl.BlockSpec((B, D), lambda j: (0, 0)),    # x: resident across tiles
                pl.BlockSpec((D, tc), lambda j: (0, j)),   # W^T: streamed class tiles
                pl.BlockSpec((B, 1), lambda j: (0, 0)),    # labels: tiny resident block
            ],
            out_specs=pl.BlockSpec((B, tc), lambda j: (0, j)),
        ),
        compiler_params=pltpu.CompilerParams(
            dimension_semantics=("parallel",),   # v7x: class tiles across both TCs
            vmem_limit_bytes=vmem_limit_bytes,
        ),
    )(embeddings, wt, labels2d)

    # Drop the padded logit columns (labels < C, so the margin is unaffected).
    return out[:, :C] if c_full != C else out


def reference(embeddings, W, labels):
    """Pure-JAX f32 reference matching the PyTorch forward."""
    x_n = embeddings / jnp.maximum(
        jnp.linalg.norm(embeddings, axis=1, keepdims=True), EPS)
    w_n = W / jnp.maximum(jnp.linalg.norm(W, axis=1, keepdims=True), EPS)
    logits = jnp.clip(x_n @ w_n.T, -1.0 + CLIP, 1.0 - CLIP)
    one_hot = jax.nn.one_hot(labels, W.shape[0], dtype=jnp.float32)
    return SCALE * (logits - MARGIN * one_hot)


if __name__ == "__main__":
    key = jax.random.PRNGKey(0)
    k_x, k_w, k_l = jax.random.split(key, 3)

    B = 8              # small batch
    IN_FEATURES = 128  # small stand-in for Config.FEATURE_DIM (=1280)
    OUT_FEATURES = 68  # Config.NUM_CLASSES (padded to 128 inside the wrapper)

    embeddings = jax.random.normal(k_x, (B, IN_FEATURES), dtype=jnp.float32)

    # nn.init.xavier_normal_: std = sqrt(2 / (fan_in + fan_out))
    xavier_std = (2.0 / (IN_FEATURES + OUT_FEATURES)) ** 0.5
    W = xavier_std * jax.random.normal(
        k_w, (OUT_FEATURES, IN_FEATURES), dtype=jnp.float32)

    labels = jax.random.randint(k_l, (B,), 0, OUT_FEATURES, dtype=jnp.int32)

    out = jax.block_until_ready(cosface(embeddings, W, labels))
    ref = reference(embeddings, W, labels)

    assert out.shape == (B, OUT_FEATURES)
    # bf16 MXU operands (f32 accumulate) -> deliberately relaxed tolerance
    # versus the pure-f32 reference (cosines are in [-1, 1], scaled by 32).
    assert jnp.allclose(out, ref, atol=1e-1), "mismatch vs reference"

    print("KERNEL_OK")
</pallas_src>

<mosaic_0001>
module attributes {stable_mosaic.version = 11 : i64} {
  func.func @cosface_kernel(%arg0: i32, %arg1: memref<8x128xf32, #tpu.memory_space<vmem>>, %arg2: memref<128x128xf32, #tpu.memory_space<vmem>>, %arg3: memref<8x1xi32, #tpu.memory_space<vmem>>, %arg4: memref<8x128xf32, #tpu.memory_space<vmem>>) attributes {dimension_semantics = [#tpu.dimension_semantics<parallel>], iteration_bounds = array<i64: 1>, scalar_prefetch = 0 : i64, scratch_operands = 0 : i64, tpu.core_type = #tpu.core_type<tc>, window_params = [{pipeline_mode = #tpu.pipeline_mode<synchronous>, transform_indices = @transform_0, window_bounds = array<i64: 8, 128>}, {transform_indices = @transform_1, window_bounds = array<i64: 128, 128>}, {pipeline_mode = #tpu.pipeline_mode<synchronous>, transform_indices = @transform_2, window_bounds = array<i64: 8, 1>}, {transform_indices = @transform_3, window_bounds = array<i64: 8, 128>}]} {
    %c0 = arith.constant 0 : index
    %c0_0 = arith.constant 0 : index
    %0 = vector.load %arg1[%c0, %c0_0] : memref<8x128xf32, #tpu.memory_space<vmem>>, vector<8x128xf32>
    %c0_1 = arith.constant 0 : index
    %c0_2 = arith.constant 0 : index
    %1 = vector.load %arg2[%c0_1, %c0_2] : memref<128x128xf32, #tpu.memory_space<vmem>>, vector<128x128xf32>
    %2 = arith.mulf %0, %0 : vector<8x128xf32>
    %cst = arith.constant dense<0.000000e+00> : vector<8xf32>
    %3 = vector.multi_reduction <add>, %2, %cst [1] : vector<8x128xf32> to vector<8xf32>
    %4 = vector.shape_cast %3 : vector<8xf32> to vector<8x1xf32>
    %cst_3 = arith.constant 1.000000e-24 : f32
    %5 = vector.broadcast %cst_3 : f32 to vector<8x1xf32>
    %6 = arith.maximumf %4, %5 : vector<8x1xf32>
    %7 = math.rsqrt %6 : vector<8x1xf32>
    %8 = arith.mulf %1, %1 : vector<128x128xf32>
    %cst_4 = arith.constant dense<0.000000e+00> : vector<128xf32>
    %9 = vector.multi_reduction <add>, %8, %cst_4 [0] : vector<128x128xf32> to vector<128xf32>
    %10 = vector.shape_cast %9 : vector<128xf32> to vector<1x128xf32>
    %cst_5 = arith.constant 1.000000e-24 : f32
    %11 = vector.broadcast %cst_5 : f32 to vector<1x128xf32>
    %12 = arith.maximumf %10, %11 : vector<1x128xf32>
    %13 = math.rsqrt %12 : vector<1x128xf32>
    %14 = arith.truncf %0 : vector<8x128xf32> to vector<8x128xbf16>
    %15 = arith.truncf %1 : vector<128x128xf32> to vector<128x128xbf16>
    %cst_6 = arith.constant dense<0.000000e+00> : vector<8x128xf32>
    %16 = tpu.matmul %14, %15, %cst_6 {dimension_numbers = #tpu.dot_dimension_numbers<[1], [0], [0], [1], [0, 0, 1, 1], [], []>} : vector<8x128xbf16>, vector<128x128xbf16>, vector<8x128xf32> -> vector<8x128xf32>
    %17 = vector.broadcast %7 : vector<8x1xf32> to vector<8x128xf32>
    %18 = arith.mulf %16, %17 : vector<8x128xf32>
    %19 = vector.broadcast %13 : vector<1x128xf32> to vector<8x128xf32>
    %20 = arith.mulf %18, %19 : vector<8x128xf32>
    %cst_7 = arith.constant -0.999998986 : f32
    %cst_8 = arith.constant 0.999998986 : f32
    %21 = vector.broadcast %cst_7 : f32 to vector<8x128xf32>
    %22 = arith.maximumf %21, %20 : vector<8x128xf32>
    %23 = vector.broadcast %cst_8 : f32 to vector<8x128xf32>
    %24 = arith.minimumf %23, %22 : vector<8x128xf32>
    %c0_9 = arith.constant 0 : index
    %c0_10 = arith.constant 0 : index
    %25 = vector.load %arg3[%c0_9, %c0_10] : memref<8x1xi32, #tpu.memory_space<vmem>>, vector<8x1xi32>
    %c128_i32 = arith.constant 128 : i32
    %26 = arith.muli %arg0, %c128_i32 : i32
    %27 = tpu.iota {dimensions = array<i32: 1>} : vector<8x128xi32>
    %28 = vector.broadcast %26 : i32 to vector<8x128xi32>
    %29 = arith.addi %28, %27 : vector<8x128xi32>
    %30 = vector.broadcast %25 : vector<8x1xi32> to vector<8x128xi32>
    %31 = arith.cmpi eq, %29, %30 : vector<8x128xi32>
    %cst_11 = arith.constant 4.000000e-01 : f32
    %32 = vector.broadcast %cst_11 : f32 to vector<8x128xf32>
    %33 = arith.subf %24, %32 : vector<8x128xf32>
    %cst_12 = arith.constant 3.200000e+01 : f32
    %34 = vector.broadcast %cst_12 : f32 to vector<8x128xf32>
    %35 = arith.mulf %34, %33 : vector<8x128xf32>
    %cst_13 = arith.constant 3.200000e+01 : f32
    %36 = vector.broadcast %cst_13 : f32 to vector<8x128xf32>
    %37 = arith.mulf %36, %24 : vector<8x128xf32>
    %38 = arith.select %31, %35, %37 : vector<8x128xi1>, vector<8x128xf32>
    %c0_14 = arith.constant 0 : index
    %c0_15 = arith.constant 0 : index
    %39 = vector.load %arg4[%c0_14, %c0_15] : memref<8x128xf32, #tpu.memory_space<vmem>>, vector<8x128xf32>
    tpu.vector_store %arg4[%c0_14, %c0_15], %38 {strides = array<i32>} : memref<8x128xf32, #tpu.memory_space<vmem>>, vector<8x128xf32>,
    return
  }
  func.func @transform_0(%arg0: i32) -> (i32, i32) {
    %c0_i32 = arith.constant 0 : i32
    %c0_i32_0 = arith.constant 0 : i32
    %c0_i32_1 = arith.constant 0 : i32
    return %c0_i32, %c0_i32_0 : i32, i32
  }
  func.func @transform_1(%arg0: i32) -> (i32, i32) {
    %c0_i32 = arith.constant 0 : i32
    %c0_i32_0 = arith.constant 0 : i32
    return %c0_i32, %arg0 : i32, i32
  }
  func.func @transform_2(%arg0: i32) -> (i32, i32) {
    %c0_i32 = arith.constant 0 : i32
    %c0_i32_0 = arith.constant 0 : i32
    %c0_i32_1 = arith.constant 0 : i32
    return %c0_i32, %c0_i32_0 : i32, i32
  }
  func.func @transform_3(%arg0: i32) -> (i32, i32) {
    %c0_i32 = arith.constant 0 : i32
    %c0_i32_0 = arith.constant 0 : i32
    return %c0_i32, %arg0 : i32, i32
  }
}

</mosaic_0001>

<bundles_post_ra>
// kernel: cosface.1
= control target key start
LH: loop header
LB: loop body
LE: loop exit
PB: predicated region body
PF: predicated region fallthrough
CT: control target
= control target key end

     0   :  { %v223_v3 = vmov 0.0   ;;  %vm224_vm0 = vmmov 0   ;;  %v225_v16 = vmov 0   ;;  %s322_s0 = inlined_call_operand.vmem [shape: f32[8,128], index: 0, kind: input, shape index: {}]   ;;  %s323_s1 = inlined_call_operand.vmem [shape: f32[128,128], index: 1, kind: input, shape index: {}]   ;;  %s324_s2 = inlined_call_operand.vmem [shape: s32[8,1], index: 2, kind: input, shape index: {}]   ;;  %s325_s3 = inlined_call_operand.hbm [shape: f32[8,128], index: 3, kind: output, shape index: {}]  }
   0x1   :  { %v17_v0 = vld [vmem:[%s323_s1] sm:$0xff]  ;;  %v18_v1 = vld [vmem:[%s323_s1 + $0x8] sm:$0xff]  ;;  %v19_v2 = vld [vmem:[%s323_s1 + $0x10] sm:$0xff]  ;;  %170 = vmatprep.subr.bf16.mxu0 %v223_v3  ;;  %186 = vmatprep.mubr.msk.bf16.mxu0 %vm224_vm0, %v223_v3 }
   0x2   :  { %v38_v4 = vmul.f32 %v17_v0, %v17_v0  ;;  %v39_v5 = vmul.f32 %v18_v1, %v18_v1  ;;  %v78_v6 = vpack.c.bf16 %v18_v1, %v17_v0  ;;  %v20_v7 = vld [vmem:[%s323_s1 + $0x18] sm:$0xff]  ;;  %v40_v8 = vmul.f32 %v19_v2, %v19_v2  ;;  %v21_v12 = vld [vmem:[%s323_s1 + $0x20] sm:$0xff]  ;;  %v22_v13 = vld [vmem:[%s323_s1 + $0x28] sm:$0xff]  ;;  %194 = vset.pattern.permute.xlu0 %v225_v16 }
   0x3   :  { %v41_v10 = vmul.f32 %v20_v7, %v20_v7  ;;  %v79_v11 = vpack.c.bf16 %v20_v7, %v19_v2  ;;  %v42_v15 = vmul.f32 %v21_v12, %v21_v12 }
   0x4   :  { %v54_v9 = vadd.f32 %v39_v5, %v38_v4  ;;  %171 = vmatpush3.bf16.msra.mxu0 %v78_v6 }
   0x5   :  { %172 = vmatprep.subr.bf16.mxu0 %v223_v3 }
   0x6   :  { %v55_v14 = vadd.f32 %v54_v9, %v40_v8 }
   0x7   :  { %8 = vsyncpa [#allocation3], 0  ;;  %v43_v18 = vmul.f32 %v22_v13, %v22_v13  ;;  %v80_v19 = vpack.c.bf16 %v22_v13, %v21_v12  ;;  %v16_v20 = vld [vmem:[%s322_s0] sm:$0xff]  ;;  %v23_v21 = vld [vmem:[%s323_s1 + $0x30] sm:$0xff]  ;;  %v132_v9 = vlaneseq }
   0x8   :  { %v56_v17 = vadd.f32 %v55_v14, %v41_v10  ;;  %173 = vmatpush3.bf16.msra.mxu0 %v79_v11  ;;  %v24_v22 = vld [vmem:[%s323_s1 + $0x38] sm:$0xff]  ;;  %v33_v23 = vmul.f32 %v16_v20, %v16_v20  ;;  %v44_v25 = vmul.f32 %v23_v21, %v23_v21  ;;  %v25_v29 = vld [vmem:[%s323_s1 + $0x40] sm:$0xff]  ;;  %v26_v30 = vld [vmem:[%s323_s1 + $0x48] sm:$0xff]  ;;  %v77_v59 = vpack.c.bf16 %v16_v20, %v16_v20 }
   0x9   :  { %174 = vmatprep.subr.bf16.mxu0 %v223_v3  ;;  %v45_v27 = vmul.f32 %v24_v22, %v24_v22  ;;  %v81_v28 = vpack.c.bf16 %v24_v22, %v23_v21  ;;  %v46_v32 = vmul.f32 %v25_v29, %v25_v29  ;;  %v47_v34 = vmul.f32 %v26_v30, %v26_v30  ;;  %v27_v36 = vld [vmem:[%s323_s1 + $0x50] sm:$0xff]  ;;  %v28_v37 = vld [vmem:[%s323_s1 + $0x58] sm:$0xff]  ;;  %v29_v43 = vld [vmem:[%s323_s1 + $0x60] sm:$0xff] }
   0xa   :  { %v57_v24 = vadd.f32 %v56_v17, %v42_v15  ;;  %34 = vadd.xlane.f32.xlu0 %v33_v23  ;;  %v82_v35 = vpack.c.bf16 %v26_v30, %v25_v29  ;;  %v48_v39 = vmul.f32 %v27_v36, %v27_v36  ;;  %v49_v41 = vmul.f32 %v28_v37, %v28_v37  ;;  %v30_v44 = vld [vmem:[%s323_s1 + $0x68] sm:$0xff]  ;;  %v31_v50 = vld [vmem:[%s323_s1 + $0x70] sm:$0xff]  ;;  %v32_v51 = vld [vmem:[%s323_s1 + $0x78] sm:$0xff]  ;;  %s226_s1 = smov [#allocation2]  }
   0xb   :  { %v83_v42 = vpack.c.bf16 %v28_v37, %v27_v36  ;;  %v50_v46 = vmul.f32 %v29_v43, %v29_v43  ;;  %v51_v48 = vmul.f32 %v30_v44, %v30_v44  ;;  %v84_v49 = vpack.c.bf16 %v30_v44, %v29_v43  ;;  %v130_v58 = vld [vmem:[%s324_s2] sm:$0xff]  ;;  %s151_s2 = sshll.u32 %s226_s1, 4  ;;  %s152_s2 = int_to_ptr.vmem [resolvable:$true] %s151_s2 }
   0xc   :  { %v58_v26 = vadd.f32 %v57_v24, %v43_v18  ;;  %175 = vmatpush3.bf16.msra.mxu0 %v80_v19  ;;  %v52_v53 = vmul.f32 %v31_v50, %v31_v50  ;;  %v53_v55 = vmul.f32 %v32_v51, %v32_v51  ;;  %v85_v56 = vpack.c.bf16 %v32_v51, %v31_v50  ;;  %s199_s20 = scalar_lea.vmem %s152_s2, 128  ;;  %p204_p1 = scmp.lt.s32.totalorder %s152_s2, %s152_s2 }
   0xd   :  { %176 = vmatprep.subr.bf16.mxu0 %v223_v3  ;;  %v133_v15 = vand.u32 127, %v132_v9  ;;  %p200_p0 = scmp.ne.s32.totalorder %s152_s2, %s199_s20  ;;  %p205_p2 = scmp.lt.s32.totalorder %s199_s20, %s199_s20 }
   0xe   :  { %v59_v31 = vadd.f32 %v58_v26, %v44_v25 }
   0xf   :  { %p206_p3 = por %p205_p2, %p204_p1 }
  0x10   :  { %v60_v33 = vadd.f32 %v59_v31, %v45_v27  ;;  %177 = vmatpush3.bf16.msra.mxu0 %v81_v28 }
  0x11   :  { %178 = vmatprep.subr.bf16.mxu0 %v223_v3  ;;  %p207_p4 = pnand %p206_p3, %p200_p0 }
  0x12   :  { %v61_v38 = vadd.f32 %v60_v33, %v46_v32 }
  0x14   :  { %v62_v40 = vadd.f32 %v61_v38, %v47_v34  ;;  %179 = vmatpush3.bf16.msra.mxu0 %v82_v35 }
  0x15   :  { %180 = vmatprep.subr.bf16.mxu0 %v223_v3 }
  0x16   :  { %v63_v45 = vadd.f32 %v62_v40, %v48_v39 }
  0x18   :  { %v64_v47 = vadd.f32 %v63_v45, %v49_v41  ;;  %181 = vmatpush3.bf16.msra.mxu0 %v83_v42 }
  0x19   :  { %182 = vmatprep.subr.bf16.mxu0 %v223_v3 }
  0x1a   :  { %v65_v52 = vadd.f32 %v64_v47, %v50_v46 }
  0x1c   :  { %v66_v54 = vadd.f32 %v65_v52, %v51_v48  ;;  %183 = vmatpush3.bf16.msra.mxu0 %v84_v49 }
  0x1d   :  { %184 = vmatprep.subr.bf16.mxu0 %v223_v3 }
  0x1e   :  { %v67_v57 = vadd.f32 %v66_v54, %v52_v53 }
  0x20   :  { %v68_v60 = vadd.f32 %v67_v57, %v53_v55  ;;  %185 = vmatpush3.bf16.msra.mxu0 %v85_v56  ;;  %137 = vperm.xlu0 %194, %v130_v58  }
  0x22   :  { %v69_v61 = vrot.slane %v68_v60, 4 }
  0x23   :  { %187 = vmatmul.mubr.bf16.vlgmr.msra.gmra.mrb[0].mxu0 %v77_v59 }
  0x24   :  { %v70_v62 = vadd.f32 %v69_v61, %v68_v60 }
  0x26   :  { %v71_v63 = vrot.slane %v70_v62, 2 }
  0x28   :  { %v72_v0 = vadd.f32 %v71_v63, %v70_v62 }
  0x2a   :  { %v73_v1 = vrot.slane %v72_v0, 1 }
  0x2c   :  { %v74_v4 = vadd.f32 %v73_v1, %v72_v0 }
  0x2e   :  { %v75_v6 = vmax.f32 %v74_v4, 1e-24 }
  0x97   :  { %v35_v2 = vpop.xlane.xlu0 %34 }
  0x98   :  { %v36_v5 = vmax.f32 %v35_v2, 1e-24 }
  0x9a   :  { %195 = vrsqrt.f32 %v36_v5 }
  0x9b   :  { %197 = vrsqrt.f32 %v75_v6 }
  0x9f   :  { %v138_v17 = vpop.permute.xlu0 %137 }
  0xa0   :  { %vm139_vm1 = vcmp.eq.s32.totalorder %v133_v15, %v138_v17 }
  0xa4   :  { %v196_v3 = vpop.eup %195 }
  0xa5   :  { %v198_v7 = vpop.eup %197 }
  0xf6   :  { %v120_v8 = vpop.f32.mrb[0].mxu0 }
  0xf7   :  { %v126_v10 = vmul.f32 %v196_v3, %v120_v8  ;;  %v188_v11 = vpop.f32.mrb[1].mxu0 }
  0xf8   :  { %v123_v12 = vpop.f32.mrb[2].mxu0 }
  0xf9   :  { %v127_v13 = vmul.f32 %v198_v7, %v126_v10  ;;  %v189_v14 = vpop.f32.mrb[3].mxu0 }
  0xfb   :  { %v159_v16 = vclamps-f32 %v127_v13, 0.999999 }
  0xfd   :  { %v160_v18 = vadd.f32 -0.4, %v159_v16  ;;  %v142_v20 = vmul.f32 32.0, %v159_v16 }
  0xff   :  { %v141_v19 = vmul.f32 32.0, %v160_v18 }
 0x101   :  { %v143_v21 = vsel %vm139_vm1, %v141_v19, %v142_v20 }
 0x102   :  { %144 = vst [vmem:[#allocation2] sm:$0xff] %v143_v21 }
 0x103   :  { %210 = shalt.err (!%p207_p4)
}
 0x104   :  { %s211_s23 = scalar_lea.hbm %s325_s3, 128 }
 0x105   :  { %p212_p5 = scmp.ne.s32.totalorder %s325_s3, %s211_s23  ;;  %p215_p6 = scmp.lt.u32.totalorder %s211_s23, %s325_s3 }
 0x107   :  { %p217_p7 = pnand %p215_p6, %p212_p5 }
 0x109   :  { %220 = shalt.err (!%p217_p7)
}
 0x10a   :  { %154 = dma.vmem_to_hbm [thread:$0]  %s152_s2, 128, %s325_s3, [#allocation3]  }
 0x10b   :  { %221 = dma.done.wait [#allocation3], 128  }
 0x10c   :  { %222 = vsyncadd [#allocation3], 4294967168 }
 0x10d   :  { %158 = vsyncpa [#allocation3], 1 }

</bundles_post_ra>
